<compile_context>
chip_gen: v5e
topology: v5e:2x2
jax: 0.10.0
libtpu: 0.0.40
codegen_flags: <defaults>
</compile_context>

<pallas_src>
import functools

import jax
import jax.numpy as jnp
from jax.experimental import pallas as pl
from jax.experimental.pallas import tpu as pltpu

LANE = 128
SUBLANE_BF16 = 16  # bf16 packs 16 sublanes per vreg


def _round_up(x, m):
    return ((x + m - 1) // m) * m


def _choose_tile_b(batch, tile_b):
    """Sublane-aligned batch tile; >= 2 grid steps when batch permits (v7x)."""
    tile_b = max(SUBLANE_BF16, min(tile_b, _round_up(batch, SUBLANE_BF16)))
    if batch >= 2 * SUBLANE_BF16:
        tile_b = min(tile_b, _round_up((batch + 1) // 2, SUBLANE_BF16))
    return _round_up(tile_b, SUBLANE_BF16)


def _net2_kernel(num_blocks, act_dtype, *refs):
    # refs layout: x, W0, b0, (W1, b1, W2, b2) * num_blocks, out
    x_ref, w0_ref, b0_ref = refs[0], refs[1], refs[2]
    out_ref = refs[-1]
    block_refs = refs[3:-1]
    assert len(block_refs) == 4 * num_blocks

    mxu_dtype = w0_ref.dtype  # bf16 MXU operands, f32 accumulation

    # First Linear + ReLU. x is cast to bf16 in-kernel (free under the MXU),
    # bias add + ReLU in f32, then activations drop to act_dtype.
    # TODO(synk): training-mode dropout would need pltpu.prng_seed/prng_random_bits.
    h = jnp.dot(x_ref[...].astype(mxu_dtype), w0_ref[...],
                preferred_element_type=jnp.float32)
    h = jnp.maximum(h + b0_ref[...], 0.0).astype(act_dtype)

    # Residual blocks, statically unrolled (fine for a handful of blocks).
    # TODO(synk): for many/large blocks, stack weights [num_blocks, n, n] and
    # add an "arbitrary" grid axis with an h accumulator in VMEM scratch so
    # weights stream through a 2-deep pipeline instead of all being resident.
    for i in range(num_blocks):
        w1_ref, b1_ref, w2_ref, b2_ref = block_refs[4 * i: 4 * i + 4]
        identity = h
        o = jnp.dot(h.astype(mxu_dtype), w1_ref[...],
                    preferred_element_type=jnp.float32)
        o = jnp.maximum(o + b1_ref[...], 0.0).astype(act_dtype)
        # dropout -> identity in eval mode
        o = jnp.dot(o.astype(mxu_dtype), w2_ref[...],
                    preferred_element_type=jnp.float32)
        o = (o + b2_ref[...]).astype(act_dtype)
        h = jnp.maximum(o + identity, 0.0)

    out_ref[...] = h.astype(out_ref.dtype)


def net2_forward(x, params, *, tile_b=512, mxu_dtype=jnp.bfloat16,
                 act_dtype=jnp.bfloat16, out_dtype=jnp.bfloat16):
    """params: dict with 'w0' [F,N], 'b0' [1,N] and list 'blocks' of (w1,b1,w2,b2).

    Weights are stored [in, out] (transposed vs. PyTorch) so the hot path is
    plain x @ W + b.  On v5e pass act_dtype=jnp.float32 (no bf16 VPU there).
    """
    batch, num_features = x.shape
    num_neurons = params["w0"].shape[1]
    num_blocks = len(params["blocks"])

    # Lane-dense padded neuron dim; zero padding stays exactly zero through
    # every matmul / bias / relu / residual add, so real columns are unchanged.
    n_pad = _round_up(num_neurons, LANE)

    tile_b = _choose_tile_b(batch, tile_b)
    batch_pad = _round_up(batch, tile_b)

    def pad_cols(a):
        return jnp.pad(a, ((0, 0), (0, n_pad - a.shape[1])))

    def pad_square(w):
        return jnp.pad(w, ((0, n_pad - w.shape[0]), (0, n_pad - w.shape[1])))

    # x stays in its native dtype; only pad the batch when tile_b doesn't divide it.
    xp = x if batch_pad == batch else jnp.pad(x, ((0, batch_pad - batch), (0, 0)))

    w0 = pad_cols(params["w0"]).astype(mxu_dtype)
    b0 = pad_cols(params["b0"]).astype(jnp.float32)

    flat_inputs = [xp, w0, b0]
    for (w1, b1, w2, b2) in params["blocks"]:
        flat_inputs += [
            pad_square(w1).astype(mxu_dtype),
            pad_cols(b1).astype(jnp.float32),
            pad_square(w2).astype(mxu_dtype),
            pad_cols(b2).astype(jnp.float32),
        ]

    grid = (batch_pad // tile_b,)

    # Weights/biases: constant block index, VMEM-resident, single-buffered
    # (no point double-buffering a block whose index never changes).
    def _resident_spec(arr):
        rank = arr.ndim
        return pl.BlockSpec(arr.shape, lambda i, _rank=rank: (0,) * _rank,
                            pipeline_mode=pl.Buffered(1))

    in_specs = [pl.BlockSpec((tile_b, num_features), lambda i: (i, 0))]
    in_specs += [_resident_spec(a) for a in flat_inputs[1:]]
    out_spec = pl.BlockSpec((tile_b, n_pad), lambda i: (i, 0))

    # Advisory cost + an explicit VMEM budget (2x double-buffered x/out tiles,
    # 1x resident weights, ~3 live intermediate tiles), clamped to v7x physical.
    flops = 2 * batch_pad * n_pad * (num_features + 2 * num_blocks * n_pad)
    resident_bytes = sum(a.size * a.dtype.itemsize for a in flat_inputs[1:])
    out_item = jnp.dtype(out_dtype).itemsize
    bytes_accessed = (xp.size * xp.dtype.itemsize + resident_bytes
                      + batch_pad * n_pad * out_item)
    cost = pl.CostEstimate(flops=flops, transcendentals=0,
                           bytes_accessed=bytes_accessed)

    x_tile_bytes = tile_b * num_features * xp.dtype.itemsize
    out_tile_bytes = tile_b * n_pad * out_item
    interm_bytes = 3 * tile_b * n_pad * 4
    vmem_budget = 2 * (x_tile_bytes + out_tile_bytes) + resident_bytes + interm_bytes
    vmem_limit = int(min(max(2 * vmem_budget, 32 * 1024 * 1024), 64 * 1024 * 1024))

    kernel = functools.partial(_net2_kernel, num_blocks, act_dtype)

    out_padded = pl.pallas_call(
        kernel,
        out_shape=jax.ShapeDtypeStruct((batch_pad, n_pad), out_dtype),
        grid=grid,
        in_specs=in_specs,
        out_specs=out_spec,
        compiler_params=pltpu.CompilerParams(
            dimension_semantics=("parallel",),
            vmem_limit_bytes=vmem_limit,
        ),
        cost_estimate=cost,
    )(*flat_inputs)

    # TODO(synk): at very large batch, pack 4 rows x 32 real neurons into one
    # 128-lane row in-kernel to skip writing the 96 zero columns entirely.
    return out_padded[:batch, :num_neurons].astype(jnp.float32)


def init_net2_params(key, num_features, num_residual_blocks, num_neurons):
    """PyTorch-default Linear init (U(-k,k), k=1/sqrt(fan_in)); weights [in,out]."""
    def linear(key, fan_in, fan_out):
        kw, kb = jax.random.split(key)
        bound = 1.0 / jnp.sqrt(fan_in)
        w = jax.random.uniform(kw, (fan_in, fan_out), jnp.float32, -bound, bound)
        b = jax.random.uniform(kb, (1, fan_out), jnp.float32, -bound, bound)
        return w, b

    keys = jax.random.split(key, 1 + 2 * num_residual_blocks)
    w0, b0 = linear(keys[0], num_features, num_neurons)
    blocks = []
    for i in range(num_residual_blocks):
        w1, b1 = linear(keys[1 + 2 * i], num_neurons, num_neurons)
        w2, b2 = linear(keys[2 + 2 * i], num_neurons, num_neurons)
        # skip_connection is nn.Identity() because in_features == out_features
        blocks.append((w1, b1, w2, b2))
    return {"w0": w0, "b0": b0, "blocks": blocks}


def net2_reference(x, params, *, mxu_dtype=jnp.bfloat16, act_dtype=jnp.bfloat16):
    """Pure-JAX reference using the same dtype path as the kernel."""
    h = jnp.dot(x.astype(mxu_dtype), params["w0"].astype(mxu_dtype),
                preferred_element_type=jnp.float32)
    h = jnp.maximum(h + params["b0"], 0.0).astype(act_dtype)
    for (w1, b1, w2, b2) in params["blocks"]:
        identity = h
        o = jnp.dot(h.astype(mxu_dtype), w1.astype(mxu_dtype),
                    preferred_element_type=jnp.float32)
        o = jnp.maximum(o + b1, 0.0).astype(act_dtype)
        o = jnp.dot(o.astype(mxu_dtype), w2.astype(mxu_dtype),
                    preferred_element_type=jnp.float32)
        o = (o + b2).astype(act_dtype)
        h = jnp.maximum(o + identity, 0.0)
    return h.astype(jnp.float32)


if __name__ == "__main__":
    # Small shapes consistent with the module: tabular features in, MLP out.
    num_features = 16
    num_neurons = 32
    num_residual_blocks = 2

    key = jax.random.PRNGKey(0)
    kx1, kx2, kx3, kp = jax.random.split(key, 4)
    params = init_net2_params(kp, num_features, num_residual_blocks, num_neurons)

    # Case 1: tiny batch (single grid step, batch padded to one 16-row tile).
    x1 = jax.random.normal(kx1, (8, num_features), jnp.float32)
    out1 = jax.block_until_ready(net2_forward(x1, params))
    ref1 = net2_reference(x1, params)
    assert out1.shape == (8, num_neurons)
    assert jnp.allclose(out1, ref1, atol=2e-2, rtol=2e-2), "mismatch vs reference (case 1)"

    # Case 2: ragged batch exercising the 2-step parallel grid + batch padding.
    x2 = jax.random.normal(kx2, (200, num_features), jnp.float32)
    out2 = jax.block_until_ready(net2_forward(x2, params))
    ref2 = net2_reference(x2, params)
    assert out2.shape == (200, num_neurons)
    assert jnp.allclose(out2, ref2, atol=2e-2, rtol=2e-2), "mismatch vs reference (case 2)"

    # Case 3: batch that tiles exactly (no pad pass, multi-step grid).
    x3 = jax.random.normal(kx3, (192, num_features), jnp.float32)
    out3 = jax.block_until_ready(net2_forward(x3, params))
    ref3 = net2_reference(x3, params)
    assert out3.shape == (192, num_neurons)
    assert jnp.allclose(out3, ref3, atol=2e-2, rtol=2e-2), "mismatch vs reference (case 3)"

    print("KERNEL_OK")
</pallas_src>

<mosaic_0001>
module attributes {stable_mosaic.version = 11 : i64} {
  func.func @_net2_kernel(%arg0: i32, %arg1: memref<16x16xf32, #tpu.memory_space<vmem>>, %arg2: memref<16x128xbf16, #tpu.memory_space<vmem>>, %arg3: memref<1x128xf32, #tpu.memory_space<vmem>>, %arg4: memref<128x128xbf16, #tpu.memory_space<vmem>>, %arg5: memref<1x128xf32, #tpu.memory_space<vmem>>, %arg6: memref<128x128xbf16, #tpu.memory_space<vmem>>, %arg7: memref<1x128xf32, #tpu.memory_space<vmem>>, %arg8: memref<128x128xbf16, #tpu.memory_space<vmem>>, %arg9: memref<1x128xf32, #tpu.memory_space<vmem>>, %arg10: memref<128x128xbf16, #tpu.memory_space<vmem>>, %arg11: memref<1x128xf32, #tpu.memory_space<vmem>>, %arg12: memref<16x128xbf16, #tpu.memory_space<vmem>>) attributes {dimension_semantics = [#tpu.dimension_semantics<parallel>], iteration_bounds = array<i64: 1>, scalar_prefetch = 0 : i64, scratch_operands = 0 : i64, tpu.core_type = #tpu.core_type<tc>, window_params = [{transform_indices = @transform_0, window_bounds = array<i64: 16, 16>}, {pipeline_mode = #tpu.pipeline_mode<synchronous>, transform_indices = @transform_1, window_bounds = array<i64: 16, 128>}, {pipeline_mode = #tpu.pipeline_mode<synchronous>, transform_indices = @transform_2, window_bounds = array<i64: 1, 128>}, {pipeline_mode = #tpu.pipeline_mode<synchronous>, transform_indices = @transform_3, window_bounds = array<i64: 128, 128>}, {pipeline_mode = #tpu.pipeline_mode<synchronous>, transform_indices = @transform_4, window_bounds = array<i64: 1, 128>}, {pipeline_mode = #tpu.pipeline_mode<synchronous>, transform_indices = @transform_5, window_bounds = array<i64: 128, 128>}, {pipeline_mode = #tpu.pipeline_mode<synchronous>, transform_indices = @transform_6, window_bounds = array<i64: 1, 128>}, {pipeline_mode = #tpu.pipeline_mode<synchronous>, transform_indices = @transform_7, window_bounds = array<i64: 128, 128>}, {pipeline_mode = #tpu.pipeline_mode<synchronous>, transform_indices = @transform_8, window_bounds = array<i64: 1, 128>}, {pipeline_mode = #tpu.pipeline_mode<synchronous>, transform_indices = @transform_9, window_bounds = array<i64: 128, 128>}, {pipeline_mode = #tpu.pipeline_mode<synchronous>, transform_indices = @transform_10, window_bounds = array<i64: 1, 128>}, {transform_indices = @transform_11, window_bounds = array<i64: 16, 128>}]} {
    %c0 = arith.constant 0 : index
    %c0_0 = arith.constant 0 : index
    %0 = vector.load %arg1[%c0, %c0_0] : memref<16x16xf32, #tpu.memory_space<vmem>>, vector<16x16xf32>
    %1 = arith.truncf %0 : vector<16x16xf32> to vector<16x16xbf16>
    %c0_1 = arith.constant 0 : index
    %c0_2 = arith.constant 0 : index
    %2 = vector.load %arg2[%c0_1, %c0_2] : memref<16x128xbf16, #tpu.memory_space<vmem>>, vector<16x128xbf16>
    %cst = arith.constant dense<0.000000e+00> : vector<16x128xf32>
    %3 = tpu.matmul %1, %2, %cst {dimension_numbers = #tpu.dot_dimension_numbers<[1], [0], [0], [1], [0, 0, 1, 1], [], []>} : vector<16x16xbf16>, vector<16x128xbf16>, vector<16x128xf32> -> vector<16x128xf32>
    %c0_3 = arith.constant 0 : index
    %c0_4 = arith.constant 0 : index
    %4 = vector.load %arg3[%c0_3, %c0_4] : memref<1x128xf32, #tpu.memory_space<vmem>>, vector<1x128xf32>
    %5 = vector.broadcast %4 : vector<1x128xf32> to vector<16x128xf32>
    %6 = arith.addf %3, %5 : vector<16x128xf32>
    %cst_5 = arith.constant 0.000000e+00 : f32
    %7 = vector.broadcast %cst_5 : f32 to vector<16x128xf32>
    %8 = arith.maximumf %6, %7 : vector<16x128xf32>
    %9 = arith.truncf %8 : vector<16x128xf32> to vector<16x128xbf16>
    %c0_6 = arith.constant 0 : index
    %c0_7 = arith.constant 0 : index
    %10 = vector.load %arg4[%c0_6, %c0_7] : memref<128x128xbf16, #tpu.memory_space<vmem>>, vector<128x128xbf16>
    %cst_8 = arith.constant dense<0.000000e+00> : vector<16x128xf32>
    %11 = tpu.matmul %9, %10, %cst_8 {dimension_numbers = #tpu.dot_dimension_numbers<[1], [0], [0], [1], [0, 0, 1, 1], [], []>} : vector<16x128xbf16>, vector<128x128xbf16>, vector<16x128xf32> -> vector<16x128xf32>
    %c0_9 = arith.constant 0 : index
    %c0_10 = arith.constant 0 : index
    %12 = vector.load %arg5[%c0_9, %c0_10] : memref<1x128xf32, #tpu.memory_space<vmem>>, vector<1x128xf32>
    %13 = vector.broadcast %12 : vector<1x128xf32> to vector<16x128xf32>
    %14 = arith.addf %11, %13 : vector<16x128xf32>
    %cst_11 = arith.constant 0.000000e+00 : f32
    %15 = vector.broadcast %cst_11 : f32 to vector<16x128xf32>
    %16 = arith.maximumf %14, %15 : vector<16x128xf32>
    %17 = arith.truncf %16 : vector<16x128xf32> to vector<16x128xbf16>
    %c0_12 = arith.constant 0 : index
    %c0_13 = arith.constant 0 : index
    %18 = vector.load %arg6[%c0_12, %c0_13] : memref<128x128xbf16, #tpu.memory_space<vmem>>, vector<128x128xbf16>
    %cst_14 = arith.constant dense<0.000000e+00> : vector<16x128xf32>
    %19 = tpu.matmul %17, %18, %cst_14 {dimension_numbers = #tpu.dot_dimension_numbers<[1], [0], [0], [1], [0, 0, 1, 1], [], []>} : vector<16x128xbf16>, vector<128x128xbf16>, vector<16x128xf32> -> vector<16x128xf32>
    %c0_15 = arith.constant 0 : index
    %c0_16 = arith.constant 0 : index
    %20 = vector.load %arg7[%c0_15, %c0_16] : memref<1x128xf32, #tpu.memory_space<vmem>>, vector<1x128xf32>
    %21 = vector.broadcast %20 : vector<1x128xf32> to vector<16x128xf32>
    %22 = arith.addf %19, %21 : vector<16x128xf32>
    %23 = arith.truncf %22 : vector<16x128xf32> to vector<16x128xbf16>
    %24 = arith.addf %23, %9 : vector<16x128xbf16>
    %cst_17 = arith.constant 0.000000e+00 : bf16
    %25 = vector.broadcast %cst_17 : bf16 to vector<16x128xbf16>
    %26 = arith.maximumf %24, %25 : vector<16x128xbf16>
    %c0_18 = arith.constant 0 : index
    %c0_19 = arith.constant 0 : index
    %27 = vector.load %arg8[%c0_18, %c0_19] : memref<128x128xbf16, #tpu.memory_space<vmem>>, vector<128x128xbf16>
    %cst_20 = arith.constant dense<0.000000e+00> : vector<16x128xf32>
    %28 = tpu.matmul %26, %27, %cst_20 {dimension_numbers = #tpu.dot_dimension_numbers<[1], [0], [0], [1], [0, 0, 1, 1], [], []>} : vector<16x128xbf16>, vector<128x128xbf16>, vector<16x128xf32> -> vector<16x128xf32>
    %c0_21 = arith.constant 0 : index
    %c0_22 = arith.constant 0 : index
    %29 = vector.load %arg9[%c0_21, %c0_22] : memref<1x128xf32, #tpu.memory_space<vmem>>, vector<1x128xf32>
    %30 = vector.broadcast %29 : vector<1x128xf32> to vector<16x128xf32>
    %31 = arith.addf %28, %30 : vector<16x128xf32>
    %cst_23 = arith.constant 0.000000e+00 : f32
    %32 = vector.broadcast %cst_23 : f32 to vector<16x128xf32>
    %33 = arith.maximumf %31, %32 : vector<16x128xf32>
    %34 = arith.truncf %33 : vector<16x128xf32> to vector<16x128xbf16>
    %c0_24 = arith.constant 0 : index
    %c0_25 = arith.constant 0 : index
    %35 = vector.load %arg10[%c0_24, %c0_25] : memref<128x128xbf16, #tpu.memory_space<vmem>>, vector<128x128xbf16>
    %cst_26 = arith.constant dense<0.000000e+00> : vector<16x128xf32>
    %36 = tpu.matmul %34, %35, %cst_26 {dimension_numbers = #tpu.dot_dimension_numbers<[1], [0], [0], [1], [0, 0, 1, 1], [], []>} : vector<16x128xbf16>, vector<128x128xbf16>, vector<16x128xf32> -> vector<16x128xf32>
    %c0_27 = arith.constant 0 : index
    %c0_28 = arith.constant 0 : index
    %37 = vector.load %arg11[%c0_27, %c0_28] : memref<1x128xf32, #tpu.memory_space<vmem>>, vector<1x128xf32>
    %38 = vector.broadcast %37 : vector<1x128xf32> to vector<16x128xf32>
    %39 = arith.addf %36, %38 : vector<16x128xf32>
    %40 = arith.truncf %39 : vector<16x128xf32> to vector<16x128xbf16>
    %41 = arith.addf %40, %26 : vector<16x128xbf16>
    %cst_29 = arith.constant 0.000000e+00 : bf16
    %42 = vector.broadcast %cst_29 : bf16 to vector<16x128xbf16>
    %43 = arith.maximumf %41, %42 : vector<16x128xbf16>
    %c0_30 = arith.constant 0 : index
    %c0_31 = arith.constant 0 : index
    %44 = vector.load %arg12[%c0_30, %c0_31] : memref<16x128xbf16, #tpu.memory_space<vmem>>, vector<16x128xbf16>
    tpu.vector_store %arg12[%c0_30, %c0_31], %43 {strides = array<i32>} : memref<16x128xbf16, #tpu.memory_space<vmem>>, vector<16x128xbf16>,
    return
  }
  func.func @transform_0(%arg0: i32) -> (i32, i32) {
    %c0_i32 = arith.constant 0 : i32
    %c0_i32_0 = arith.constant 0 : i32
    return %arg0, %c0_i32 : i32, i32
  }
  func.func @transform_1(%arg0: i32) -> (i32, i32) {
    %c0_i32 = arith.constant 0 : i32
    %c0_i32_0 = arith.constant 0 : i32
    %c0_i32_1 = arith.constant 0 : i32
    return %c0_i32, %c0_i32_0 : i32, i32
  }
  func.func @transform_2(%arg0: i32) -> (i32, i32) {
    %c0_i32 = arith.constant 0 : i32
    %c0_i32_0 = arith.constant 0 : i32
    %c0_i32_1 = arith.constant 0 : i32
    return %c0_i32, %c0_i32_0 : i32, i32
  }
  func.func @transform_3(%arg0: i32) -> (i32, i32) {
    %c0_i32 = arith.constant 0 : i32
    %c0_i32_0 = arith.constant 0 : i32
    %c0_i32_1 = arith.constant 0 : i32
    return %c0_i32, %c0_i32_0 : i32, i32
  }
  func.func @transform_4(%arg0: i32) -> (i32, i32) {
    %c0_i32 = arith.constant 0 : i32
    %c0_i32_0 = arith.constant 0 : i32
    %c0_i32_1 = arith.constant 0 : i32
    return %c0_i32, %c0_i32_0 : i32, i32
  }
  func.func @transform_5(%arg0: i32) -> (i32, i32) {
    %c0_i32 = arith.constant 0 : i32
    %c0_i32_0 = arith.constant 0 : i32
    %c0_i32_1 = arith.constant 0 : i32
    return %c0_i32, %c0_i32_0 : i32, i32
  }
  func.func @transform_6(%arg0: i32) -> (i32, i32) {
    %c0_i32 = arith.constant 0 : i32
    %c0_i32_0 = arith.constant 0 : i32
    %c0_i32_1 = arith.constant 0 : i32
    return %c0_i32, %c0_i32_0 : i32, i32
  }
  func.func @transform_7(%arg0: i32) -> (i32, i32) {
    %c0_i32 = arith.constant 0 : i32
    %c0_i32_0 = arith.constant 0 : i32
    %c0_i32_1 = arith.constant 0 : i32
    return %c0_i32, %c0_i32_0 : i32, i32
  }
  func.func @transform_8(%arg0: i32) -> (i32, i32) {
    %c0_i32 = arith.constant 0 : i32
    %c0_i32_0 = arith.constant 0 : i32
    %c0_i32_1 = arith.constant 0 : i32
    return %c0_i32, %c0_i32_0 : i32, i32
  }
  func.func @transform_9(%arg0: i32) -> (i32, i32) {
    %c0_i32 = arith.constant 0 : i32
    %c0_i32_0 = arith.constant 0 : i32
    %c0_i32_1 = arith.constant 0 : i32
    return %c0_i32, %c0_i32_0 : i32, i32
  }
  func.func @transform_10(%arg0: i32) -> (i32, i32) {
    %c0_i32 = arith.constant 0 : i32
    %c0_i32_0 = arith.constant 0 : i32
    %c0_i32_1 = arith.constant 0 : i32
    return %c0_i32, %c0_i32_0 : i32, i32
  }
  func.func @transform_11(%arg0: i32) -> (i32, i32) {
    %c0_i32 = arith.constant 0 : i32
    %c0_i32_0 = arith.constant 0 : i32
    return %arg0, %c0_i32 : i32, i32
  }
}

</mosaic_0001>

<bundles_post_ra>
// kernel: tpu_custom_call.1
= control target key start
LH: loop header
LB: loop body
LE: loop exit
PB: predicated region body
PF: predicated region fallthrough
CT: control target
= control target key end

     0   :  { %16 = vsyncpa [#allocation3], 0  ;;  %s1063_s0 = inlined_call_operand.hbm [shape: f32[16,16], index: 0, kind: input, shape index: {}]   ;;  %s1064_s1 = inlined_call_operand.hbm [shape: bf16[16,128], index: 1, kind: input, shape index: {}]   ;;  %s1065_s2 = inlined_call_operand.vmem [shape: f32[1,128], index: 2, kind: input, shape index: {}]   ;;  %s1066_s3 = inlined_call_operand.hbm [shape: bf16[128,128], index: 3, kind: input, shape index: {}]   ;;  %s1067_s4 = inlined_call_operand.vmem [shape: f32[1,128], index: 4, kind: input, shape index: {}]   ;;  %s1068_s5 = inlined_call_operand.hbm [shape: bf16[128,128], index: 5, kind: input, shape index: {}]   ;;  %s1069_s6 = inlined_call_operand.vmem [shape: f32[1,128], index: 6, kind: input, shape index: {}]   ;;  %s1070_s7 = inlined_call_operand.hbm [shape: bf16[128,128], index: 7, kind: input, shape index: {}]   ;;  %s1071_s8 = inlined_call_operand.vmem [shape: f32[1,128], index: 8, kind: input, shape index: {}]   ;;  %s1072_s9 = inlined_call_operand.hbm [shape: bf16[128,128], index: 9, kind: input, shape index: {}]   ;;  %s1073_s10 = inlined_call_operand.vmem [shape: f32[1,128], index: 10, kind: input, shape index: {}]   ;;  %s1074_s11 = inlined_call_operand.hbm [shape: bf16[16,128], index: 11, kind: output, shape index: {}]  }
   0x1   :  { %17 = vsyncpa [#allocation6], 0 }
   0x2   :  { %18 = vsyncpa [#allocation9], 0 }
   0x3   :  { %19 = vsyncpa [#allocation12], 0  ;;  %s38_s19 = sshll.u32 %s1064_s1, 4  ;;  %s39_s19 = int_to_ptr.hbm [resolvable:$true] %s38_s19 }
   0x4   :  { %20 = vsyncpa [#allocation4], 0  ;;  %s938_s20 = smov [#allocation5]   ;;  %s68_s24 = sshll.u32 %s1068_s5, 4  ;;  %s69_s24 = int_to_ptr.hbm [resolvable:$true] %s68_s24 }
   0x5   :  { %s40_s21 = sshll.u32 %s938_s20, 4  ;;  %s939_s25 = smov 64   ;;  %s41_s21 = int_to_ptr.vmem [resolvable:$true] %s40_s21 }
   0x6   :  { %s940_s26 = smov 4   ;;  %s941_s27 = smov [#allocation8]  }
   0x7   :  { %46 = dma.hbm_to_vmem [thread:$0]  %s39_s19, 128, %s41_s21, [#allocation6], %s939_s25, %s939_s25, %s940_s26  }
   0x8   :  { %s70_s28 = sshll.u32 %s941_s27, 4  ;;  %s25_s30 = sshll.u32 %s1063_s0, 4  ;;  %s71_s28 = int_to_ptr.vmem [resolvable:$true] %s70_s28  ;;  %s26_s30 = int_to_ptr.hbm [resolvable:$true] %s25_s30 }
   0x9   :  { %76 = dma.hbm_to_vmem [thread:$0]  %s69_s24, 1024, %s71_s28, [#allocation9], %s939_s25, %s939_s25, %s940_s26  }
   0xa   :  { %s942_s5 = smov [#allocation2]   ;;  %s53_s15 = sshll.u32 %s1066_s3, 4  ;;  %s54_s15 = int_to_ptr.hbm [resolvable:$true] %s53_s15 }
   0xb   :  { %s27_s12 = sshll.u32 %s942_s5, 4  ;;  %s943_s16 = smov 128   ;;  %s28_s12 = int_to_ptr.vmem [resolvable:$true] %s27_s12 }
   0xc   :  { %s944_s17 = smov 8   ;;  %s945_s18 = smov [#allocation7]  }
   0xd   :  { %33 = dma.hbm_to_vmem [thread:$0]  %s26_s30, 256, %s28_s12, [#allocation3], %s943_s16, %s943_s16, %s944_s17  }
   0xe   :  { %s55_s19 = sshll.u32 %s945_s18, 4  ;;  %s83_s21 = sshll.u32 %s1070_s7, 4  ;;  %s56_s19 = int_to_ptr.vmem [resolvable:$true] %s55_s19  ;;  %s84_s21 = int_to_ptr.hbm [resolvable:$true] %s83_s21 }
   0xf   :  { %61 = dma.hbm_to_vmem [thread:$0]  %s54_s15, 1024, %s56_s19, [#allocation6], %s939_s25, %s939_s25, %s940_s26  }
  0x10   :  { %s98_s3 = sshll.u32 %s1072_s9, 4  ;;  %s946_s24 = smov [#allocation10]   ;;  %s99_s3 = int_to_ptr.hbm [resolvable:$true] %s98_s3 }
  0x11   :  { %s85_s27 = sshll.u32 %s946_s24, 4  ;;  %s947_s28 = smov [#allocation11]   ;;  %s86_s27 = int_to_ptr.vmem [resolvable:$true] %s85_s27 }
  0x12   :  { %91 = dma.hbm_to_vmem [thread:$0]  %s84_s21, 1024, %s86_s27, [#allocation9], %s939_s25, %s939_s25, %s940_s26  }
  0x13   :  { %s100_s7 = sshll.u32 %s947_s28, 4  ;;  %s101_s7 = int_to_ptr.vmem [resolvable:$true] %s100_s7 }
  0x14   :  { %106 = dma.hbm_to_vmem [thread:$0]  %s99_s3, 1024, %s101_s7, [#allocation12], %s939_s25, %s939_s25, %s940_s26  }
  0x15   :  { %928 = dma.done.wait [#allocation3], 256  }
  0x16   :  { %929 = vsyncadd [#allocation3], 4294967040 }
  0x17   :  { %930 = dma.done.wait [#allocation6], 1152  }
  0x18   :  { %931 = vsyncadd [#allocation6], 4294966144 }
  0x19   :  { %932 = dma.done.wait [#allocation9], 2048  }
  0x1a   :  { %933 = vsyncadd [#allocation9], 4294965248 }
  0x1b   :  { %934 = dma.done.wait [#allocation12], 1024  }
  0x1c   :  { %935 = vsyncadd [#allocation12], 4294966272  ;;  %v706_v0 = vld [vmem:[#allocation5] sm:$0xff]  ;;  %v134_v1 = vld [vmem:[#allocation2] sm:$0xff]  ;;  %vm149_vm0 = vcmask 130048   ;;  %s557_s17 = sshll.u32 %s1074_s11, 4  ;;  %s558_s17 = int_to_ptr.hbm [resolvable:$true] %s557_s17 }
  0x1d   :  { %v135_v2 = vld [vmem:[#allocation2 + $0x8] sm:$0xff]  ;;  %v714_v4 = vld [vmem:[#allocation7 + $0x38] sm:$0xff]  ;;  %160 = vmatpush.bf16.msra.mxu0 %v706_v0  ;;  %v712_v6 = vld [vmem:[#allocation7 + $0x28] sm:$0xff] }
  0x1e   :  { %v136_v3 = vpack.c.bf16 %v135_v2, %v134_v1  ;;  %v713_v5 = vld [vmem:[#allocation7 + $0x30] sm:$0xff]  ;;  %245 = vmatpush.bf16.msra.mxu1 %v714_v4  ;;  %v711_v7 = vld [vmem:[#allocation7 + $0x20] sm:$0xff]  ;;  %v710_v8 = vld [vmem:[#allocation7 + $0x18] sm:$0xff] }
  0x1f   :  { %v709_v9 = vld [vmem:[#allocation7 + $0x10] sm:$0xff]  ;;  %v708_v10 = vld [vmem:[#allocation7 + $0x8] sm:$0xff]  ;;  %v707_v11 = vld [vmem:[#allocation7] sm:$0xff] }
  0x20   :  { %577 = vmatmul.msk.bf16.vlgmr.msra.gmra.mxu0 %vm149_vm0, %v136_v3  ;;  %v722_v12 = vld [vmem:[#allocation8 + $0x38] sm:$0xff]  ;;  %v721_v13 = vld [vmem:[#allocation8 + $0x30] sm:$0xff]  ;;  %v720_v14 = vld [vmem:[#allocation8 + $0x28] sm:$0xff] }
  0x21   :  { %330 = vmatpush.bf16.msra.mxu2 %v722_v12  ;;  %v719_v15 = vld [vmem:[#allocation8 + $0x20] sm:$0xff]  ;;  %v755_v16 = vld [vmem:[%s1065_s2] ss:$0 sm:$0xff]  ;;  %v718_v28 = vld [vmem:[#allocation8 + $0x18] sm:$0xff] }
  0x22   :  { %246 = vmatpush.bf16.msra.mxu1 %v713_v5  ;;  %v717_v29 = vld [vmem:[#allocation8 + $0x10] sm:$0xff]  ;;  %v716_v30 = vld [vmem:[#allocation8 + $0x8] sm:$0xff]  ;;  %v715_v31 = vld [vmem:[#allocation8] sm:$0xff] }
  0x23   :  { %v730_v32 = vld [vmem:[#allocation10 + $0x38] sm:$0xff]  ;;  %v729_v33 = vld [vmem:[#allocation10 + $0x30] sm:$0xff]  ;;  %v756_v35 = vld [vmem:[%s1067_s4] ss:$0 sm:$0xff] }
  0x24   :  { %434 = vmatpush.bf16.msra.mxu3 %v730_v32  ;;  %v728_v42 = vld [vmem:[#allocation10 + $0x28] sm:$0xff]  ;;  %v727_v43 = vld [vmem:[#allocation10 + $0x20] sm:$0xff]  ;;  %v726_v44 = vld [vmem:[#allocation10 + $0x18] sm:$0xff] }
  0x25   :  { %331 = vmatpush.bf16.msra.mxu2 %v721_v13  ;;  %v725_v45 = vld [vmem:[#allocation10 + $0x10] sm:$0xff]  ;;  %v724_v46 = vld [vmem:[#allocation10 + $0x8] sm:$0xff]  ;;  %v723_v47 = vld [vmem:[#allocation10] sm:$0xff] }
  0x26   :  { %247 = vmatpush.bf16.msra.mxu1 %v712_v6  ;;  %v738_v48 = vld [vmem:[#allocation11 + $0x38] sm:$0xff]  ;;  %v737_v49 = vld [vmem:[#allocation11 + $0x30] sm:$0xff]  ;;  %v757_v50 = vld [vmem:[%s1069_s6] ss:$0 sm:$0xff] }
  0x27   :  { %519 = vmatpush.bf16.msrb.mxu0 %v738_v48  ;;  %v736_v51 = vld [vmem:[#allocation11 + $0x28] sm:$0xff]  ;;  %v735_v55 = vld [vmem:[#allocation11 + $0x20] sm:$0xff] }
  0x28   :  { %435 = vmatpush.bf16.msra.mxu3 %v729_v33  ;;  %v758_v13 = vld [vmem:[%s1071_s8] ss:$0 sm:$0xff]  ;;  %s948_s8 = smov [#allocation13]  }
  0x29   :  { %332 = vmatpush.bf16.msra.mxu2 %v720_v14  ;;  %s555_s14 = sshll.u32 %s948_s8, 4  ;;  %s556_s14 = int_to_ptr.vmem [resolvable:$true] %s555_s14 }
  0x2a   :  { %248 = vmatpush.bf16.msra.mxu1 %v711_v7 }
  0x2b   :  { %520 = vmatpush.bf16.msrb.mxu0 %v737_v49 }
  0x2c   :  { %436 = vmatpush.bf16.msra.mxu3 %v728_v42 }
  0x2d   :  { %333 = vmatpush.bf16.msra.mxu2 %v719_v15 }
  0x2e   :  { %249 = vmatpush.bf16.msra.mxu1 %v710_v8  ;;  %v734_v8 = vld [vmem:[#allocation11 + $0x18] sm:$0xff] }
  0x2f   :  { %521 = vmatpush.bf16.msrb.mxu0 %v736_v51 }
  0x30   :  { %437 = vmatpush.bf16.msra.mxu3 %v727_v43 }
  0x31   :  { %334 = vmatpush.bf16.msra.mxu2 %v718_v28 }
  0x32   :  { %250 = vmatpush.bf16.msra.mxu1 %v709_v9  ;;  %v733_v9 = vld [vmem:[#allocation11 + $0x10] sm:$0xff] }
  0x33   :  { %522 = vmatpush.bf16.msrb.mxu0 %v735_v55 }
  0x34   :  { %438 = vmatpush.bf16.msra.mxu3 %v726_v44 }
  0x35   :  { %335 = vmatpush.bf16.msra.mxu2 %v717_v29 }
  0x36   :  { %251 = vmatpush.bf16.msra.mxu1 %v708_v10  ;;  %v732_v10 = vld [vmem:[#allocation11 + $0x8] sm:$0xff] }
  0x37   :  { %523 = vmatpush.bf16.msrb.mxu0 %v734_v8 }
  0x38   :  { %439 = vmatpush.bf16.msra.mxu3 %v725_v45 }
  0x39   :  { %336 = vmatpush.bf16.msra.mxu2 %v716_v30 }
  0x3a   :  { %252 = vmatpush.bf16.msra.mxu1 %v707_v11  ;;  %v731_v11 = vld [vmem:[#allocation11] sm:$0xff] }
  0x3b   :  { %524 = vmatpush.bf16.msrb.mxu0 %v733_v9 }
  0x3c   :  { %440 = vmatpush.bf16.msra.mxu3 %v724_v46 }
  0x3d   :  { %337 = vmatpush.bf16.msra.mxu2 %v715_v31 }
  0x3f   :  { %525 = vmatpush.bf16.msrb.mxu0 %v732_v10 }
  0x40   :  { %441 = vmatpush.bf16.msra.mxu3 %v723_v47 }
  0x43   :  { %526 = vmatpush.bf16.msrb.mxu0 %v731_v11 }
  0x9d   :  { %v162_v17 = vpop.f32.mrf.mxu0 }
  0x9e   :  { %v163_v18 = vadd.f32 %v755_v16, %v162_v17 }
  0xa0   :  { %v167_v19 = vmax.f32 %v163_v18, 0.0 }
  0xa2   :  { %v169_v22 = vpack.c.bf16 %v167_v19, %v167_v19 }
  0xa4   :  { %v193_v25 = vunpack.c.l.b16 %v169_v22  ;;  %v348_v57 = vunpack.c.l.bf16 %v169_v22 }
  0xa5   :  { %v164_v20 = vpop.f32.mrf.mxu0 }
  0xa6   :  { %v165_v21 = vadd.f32 %v755_v16, %v164_v20  ;;  %v759_v20 = vld [vmem:[%s1073_s10] ss:$0 sm:$0xff] }
  0xa8   :  { %v168_v23 = vmax.f32 %v165_v21, 0.0 }
  0xaa   :  { %v170_v24 = vpack.c.bf16 %v168_v23, %v168_v23 }
  0xac   :  { %v194_v26 = vunpack.c.l.b16 %v170_v24  ;;  %v349_v62 = vunpack.c.l.bf16 %v170_v24 }
  0xae   :  { %v195_v27 = vpack.c.b16 %v194_v26, %v193_v25 }
  0xb0   :  { %253 = vmatmul.bf16.vlgmr.msra.gmra.mxu1 %v195_v27 }
 0x12d   :  { %v254_v34 = vpop.f32.mrf.mxu1 }
 0x12e   :  { %v255_v36 = vadd.f32 %v756_v35, %v254_v34 }
 0x130   :  { %v259_v39 = vmax.f32 %v255_v36, 0.0 }
 0x135   :  { %v256_v37 = vpop.f32.mrf.mxu1 }
 0x136   :  { %v257_v38 = vadd.f32 %v756_v35, %v256_v37 }
 0x138   :  { %v260_v40 = vmax.f32 %v257_v38, 0.0 }
 0x13a   :  { %v261_v41 = vpack.c.bf16 %v260_v40, %v259_v39 }
 0x13c   :  { %338 = vmatmul.bf16.vlgmr.msra.gmra.mxu2 %v261_v41 }
 0x1bf   :  { %v339_v52 = vpop.f32.mrf.mxu2 }
 0x1c0   :  { %v340_v53 = vadd.f32 %v757_v50, %v339_v52 }
 0x1c2   :  { %v344_v54 = vpack.c.bf16 %v340_v53, %v340_v53 }
 0x1c4   :  { %v346_v56 = vunpack.c.l.bf16 %v344_v54 }
 0x1c6   :  { %v350_v59 = vadd.f32 %v348_v57, %v346_v56 }
 0x1c7   :  { %v341_v58 = vpop.f32.mrf.mxu2 }
 0x1c8   :  { %v342_v60 = vadd.f32 %v757_v50, %v341_v58  ;;  %v356_v63 = vmax.f32 %v350_v59, 0.0 }
 0x1ca   :  { %v345_v61 = vpack.c.bf16 %v342_v60, %v342_v60  ;;  %v358_v2 = vpack.c.bf16 %v356_v63, %v356_v63 }
 0x1cc   :  { %v347_v0 = vunpack.c.l.bf16 %v345_v61  ;;  %v382_v5 = vunpack.c.l.b16 %v358_v2  ;;  %v537_v27 = vunpack.c.l.bf16 %v358_v2 }
 0x1ce   :  { %v351_v1 = vadd.f32 %v349_v62, %v347_v0 }
 0x1d0   :  { %v357_v3 = vmax.f32 %v351_v1, 0.0 }
 0x1d2   :  { %v359_v4 = vpack.c.bf16 %v357_v3, %v357_v3 }
 0x1d4   :  { %v383_v6 = vunpack.c.l.b16 %v359_v4  ;;  %v538_v31 = vunpack.c.l.bf16 %v359_v4 }
 0x1d6   :  { %v384_v7 = vpack.c.b16 %v383_v6, %v382_v5 }
 0x1d8   :  { %442 = vmatmul.bf16.vlgmr.msra.gmra.mxu3 %v384_v7 }
 0x25b   :  { %v443_v12 = vpop.f32.mrf.mxu3 }
 0x25c   :  { %v444_v14 = vadd.f32 %v758_v13, %v443_v12 }
 0x25e   :  { %v448_v17 = vmax.f32 %v444_v14, 0.0 }
 0x263   :  { %v445_v15 = vpop.f32.mrf.mxu3 }
 0x264   :  { %v446_v16 = vadd.f32 %v758_v13, %v445_v15 }
 0x266   :  { %v449_v18 = vmax.f32 %v446_v16, 0.0 }
 0x268   :  { %v450_v19 = vpack.c.bf16 %v449_v18, %v448_v17 }
 0x26a   :  { %527 = vmatmul.bf16.vlgmr.msrb.gmra.mxu0 %v450_v19 }
 0x2e7   :  { %v528_v21 = vpop.f32.mrf.mxu0 }
 0x2e8   :  { %v529_v22 = vadd.f32 %v759_v20, %v528_v21 }
 0x2ea   :  { %v533_v23 = vpack.c.bf16 %v529_v22, %v529_v22 }
 0x2ec   :  { %v535_v25 = vunpack.c.l.bf16 %v533_v23 }
 0x2ee   :  { %v539_v29 = vadd.f32 %v537_v27, %v535_v25 }
 0x2ef   :  { %v530_v24 = vpop.f32.mrf.mxu0 }
 0x2f0   :  { %v531_v26 = vadd.f32 %v759_v20, %v530_v24  ;;  %v545_v33 = vmax.f32 %v539_v29, 0.0 }
 0x2f2   :  { %v534_v28 = vpack.c.bf16 %v531_v26, %v531_v26 }
 0x2f4   :  { %v536_v30 = vunpack.c.l.bf16 %v534_v28 }
 0x2f6   :  { %v540_v32 = vadd.f32 %v538_v31, %v536_v30 }
 0x2f8   :  { %v546_v34 = vmax.f32 %v540_v32, 0.0 }
 0x2fa   :  { %v742_v35 = vpack.c.bf16 %v546_v34, %v545_v33 }
 0x2fc   :  { %743 = vst [vmem:[#allocation13] sm:$0xff] %v742_v35  }
 0x2fd   :  { %563 = dma.vmem_to_hbm [thread:$0]  %s556_s14, 128, %s558_s17, [#allocation4], %s939_s25, %s939_s25, %s940_s26  }
 0x2fe   :  { %936 = dma.done.wait [#allocation4], 128  }
 0x2ff   :  { %937 = vsyncadd [#allocation4], 4294967168 }
 0x300   :  { %568 = vsyncpa [#allocation3], 1 }
 0x301   :  { %569 = vsyncpa [#allocation6], 1 }
 0x302   :  { %570 = vsyncpa [#allocation9], 1 }
 0x303   :  { %571 = vsyncpa [#allocation12], 1 }
 0x304   :  { %572 = vsyncpa [#allocation4], 1 }

</bundles_post_ra>
